<compile_context>
chip_gen: v7x
topology: tpu7x:2x2x1
jax: 0.10.0
libtpu: 0.0.40
codegen_flags: <defaults>
</compile_context>

<pallas_src>
import jax
import jax.numpy as jnp
from jax.experimental import pallas as pl
from jax.experimental.pallas import tpu as pltpu


def rnn_fc_kernel(x_ref,      # (T, B, 1)  time-major input, f32
                  wih_ref,    # (1, H)     W_ih^T (input_size = 1), f32
                  whh_ref,    # (H, H)     W_hh^T, bf16 (MXU inputs)
                  bsum_ref,   # (1, H)     b_ih + b_hh, f32
                  fcw_ref,    # (1, H)     fc weight, f32
                  fcb_ref,    # (1, 1)     fc bias, f32
                  out_ref,    # (T, B, 1)  tanh(fc(rnn outputs)), f32
                  h_ref,      # (B, H)     final hidden state, f32
                  hall_ref):  # (T, B, H)  scratch: all hidden states, f32
    T, B, _ = x_ref.shape

    # Hoist loop-invariant reads out of the recurrence.
    whh = whh_ref[...]                                     # (H, H) bf16

    # Non-recurrent work, done once for every timestep (off the serial path):
    #   pre[t] = x[t] * W_ih^T + (b_ih + b_hh)   -> (T, B, H)
    pre = x_ref[...] * wih_ref[...][None] + bsum_ref[...][None]

    # Serial recurrence: h lives in registers; T is static -> fully unrolled.
    h = jnp.zeros((B, whh.shape[0]), jnp.float32)
    for t in range(T):
        z = pre[t] + jnp.dot(h.astype(jnp.bfloat16), whh,
                             preferred_element_type=jnp.float32)
        h = jnp.tanh(z)                                    # (B, H) f32
        hall_ref[t] = h          # store only; never re-read inside the loop

    h_ref[...] = h               # single final write of the hidden state

    # FC head once over all timesteps: out = tanh(H_all . fc_w^T + fc_b)
    h_all = hall_ref[...]                                  # (T, B, H)
    y = jnp.sum(h_all * fcw_ref[...][None], axis=-1, keepdims=True) \
        + fcb_ref[...][None]                               # (T, B, 1)
    out_ref[...] = jnp.tanh(y)                             # one dense store


def model_forward(x, params):
    """x: (B, T, 1) float32 (batch_first, like the PyTorch module)."""
    B, T, _ = x.shape
    H = params["w_hh"].shape[0]
    x_tm = jnp.transpose(x, (1, 0, 2))                     # (T, B, 1) time-major

    bsum = (params["b_ih"] + params["b_hh"])[None, :]      # (1, H) folded biases
    whh_bf16 = params["w_hh"].T.astype(jnp.bfloat16)       # (H, H) bf16 MXU input

    out_tm, h_last = pl.pallas_call(
        rnn_fc_kernel,
        out_shape=(
            jax.ShapeDtypeStruct((T, B, 1), jnp.float32),
            jax.ShapeDtypeStruct((B, H), jnp.float32),
        ),
        in_specs=[pl.BlockSpec(memory_space=pltpu.MemorySpace.VMEM)] * 6,
        out_specs=(
            pl.BlockSpec(memory_space=pltpu.MemorySpace.VMEM),
            pl.BlockSpec(memory_space=pltpu.MemorySpace.VMEM),
        ),
        scratch_shapes=[pltpu.VMEM((T, B, H), jnp.float32)],
    )(
        x_tm,
        params["w_ih"].T,          # (1, H)
        whh_bf16,                  # (H, H) bf16
        bsum,                      # (1, H)
        params["fc_w"],            # (1, H)
        params["fc_b"][None, :],   # (1, 1)
    )

    out = jnp.transpose(out_tm, (1, 0, 2))                 # back to (B, T, 1)
    h = h_last[None, :, :]                                 # (num_layers=1, B, H)
    return out, h


def init_params(key, n_hidden):
    """Deterministic init mimicking PyTorch's U(-1/sqrt(H), 1/sqrt(H))."""
    H = n_hidden
    bound = 1.0 / jnp.sqrt(jnp.float32(H))
    ks = jax.random.split(key, 6)
    u = lambda k, shape: jax.random.uniform(k, shape, jnp.float32, -bound, bound)
    return {
        "w_ih": u(ks[0], (H, 1)),   # rnn1.weight_ih_l0
        "w_hh": u(ks[1], (H, H)),   # rnn1.weight_hh_l0
        "b_ih": u(ks[2], (H,)),     # rnn1.bias_ih_l0
        "b_hh": u(ks[3], (H,)),     # rnn1.bias_hh_l0
        "fc_w": u(ks[4], (1, H)),   # fc.weight
        "fc_b": u(ks[5], (1,)),     # fc.bias
    }


def reference_forward(x, params):
    """Pure-JAX f32 reference of the PyTorch forward (h=None path)."""
    B, T, _ = x.shape
    H = params["w_hh"].shape[0]
    h = jnp.zeros((B, H), jnp.float32)
    outs = []
    for t in range(T):
        x_t = x[:, t, :]  # (B, 1)
        h = jnp.tanh(x_t @ params["w_ih"].T + params["b_ih"]
                     + h @ params["w_hh"].T + params["b_hh"])
        outs.append(jnp.tanh(h @ params["fc_w"].T + params["fc_b"]))
    out = jnp.stack(outs, axis=1)  # (B, T, 1)
    return out, h[None]


if __name__ == "__main__":
    B, T, H = 2, 8, 32
    key = jax.random.PRNGKey(0)
    k_p, k_x = jax.random.split(key)
    params = init_params(k_p, H)
    x = jax.random.normal(k_x, (B, T, 1), jnp.float32)

    out, h = model_forward(x, params)
    out = jax.block_until_ready(out)
    h = jax.block_until_ready(h)

    out_ref, h_ref = reference_forward(x, params)
    assert out.shape == (B, T, 1) and h.shape == (1, B, H)
    # Tolerance relaxed vs. 1e-5 because the recurrent matmul uses bf16 MXU
    # inputs (f32 accumulation), as recommended in the performance review.
    assert jnp.allclose(out, out_ref, atol=5e-2, rtol=1e-3)
    assert jnp.allclose(h, h_ref, atol=5e-2, rtol=1e-3)

    print("KERNEL_OK")
</pallas_src>

<mosaic_0001>
module attributes {stable_mosaic.version = 11 : i64} {
  func.func @rnn_fc_kernel(%arg0: memref<8x2x1xf32, #tpu.memory_space<vmem>>, %arg1: memref<1x32xf32, #tpu.memory_space<vmem>>, %arg2: memref<32x32xbf16, #tpu.memory_space<vmem>>, %arg3: memref<1x32xf32, #tpu.memory_space<vmem>>, %arg4: memref<1x32xf32, #tpu.memory_space<vmem>>, %arg5: memref<1x1xf32, #tpu.memory_space<vmem>>, %arg6: memref<8x2x1xf32, #tpu.memory_space<vmem>>, %arg7: memref<2x32xf32, #tpu.memory_space<vmem>>, %arg8: memref<8x2x32xf32, #tpu.memory_space<vmem>>) attributes {dimension_semantics = [], scalar_prefetch = 0 : i64, scratch_operands = 1 : i64, tpu.core_type = #tpu.core_type<tc>} {
    %c0 = arith.constant 0 : index
    %c0_0 = arith.constant 0 : index
    %0 = vector.load %arg2[%c0, %c0_0] : memref<32x32xbf16, #tpu.memory_space<vmem>>, vector<32x32xbf16>
    %c0_1 = arith.constant 0 : index
    %c0_2 = arith.constant 0 : index
    %c0_3 = arith.constant 0 : index
    %1 = vector.load %arg0[%c0_1, %c0_2, %c0_3] : memref<8x2x1xf32, #tpu.memory_space<vmem>>, vector<8x2x1xf32>
    %c0_4 = arith.constant 0 : index
    %c0_5 = arith.constant 0 : index
    %2 = vector.load %arg1[%c0_4, %c0_5] : memref<1x32xf32, #tpu.memory_space<vmem>>, vector<1x32xf32>
    %3 = vector.shape_cast %2 : vector<1x32xf32> to vector<1x1x32xf32>
    %4 = vector.broadcast %1 : vector<8x2x1xf32> to vector<8x2x32xf32>
    %5 = vector.broadcast %3 : vector<1x1x32xf32> to vector<8x2x32xf32>
    %6 = arith.mulf %4, %5 : vector<8x2x32xf32>
    %c0_6 = arith.constant 0 : index
    %c0_7 = arith.constant 0 : index
    %7 = vector.load %arg3[%c0_6, %c0_7] : memref<1x32xf32, #tpu.memory_space<vmem>>, vector<1x32xf32>
    %8 = vector.shape_cast %7 : vector<1x32xf32> to vector<1x1x32xf32>
    %9 = vector.broadcast %8 : vector<1x1x32xf32> to vector<8x2x32xf32>
    %10 = arith.addf %6, %9 : vector<8x2x32xf32>
    %cst = arith.constant 0.000000e+00 : f32
    %11 = vector.broadcast %cst : f32 to vector<2x32xf32>
    %12 = vector.extract_strided_slice %10 {offsets = [0, 0, 0], sizes = [1, 2, 32], strides = [1, 1, 1]} : vector<8x2x32xf32> to vector<1x2x32xf32>
    %13 = vector.shape_cast %12 : vector<1x2x32xf32> to vector<2x32xf32>
    %14 = arith.truncf %11 : vector<2x32xf32> to vector<2x32xbf16>
    %cst_8 = arith.constant dense<0.000000e+00> : vector<2x32xf32>
    %15 = tpu.matmul %14, %0, %cst_8 {dimension_numbers = #tpu.dot_dimension_numbers<[1], [0], [0], [1], [0, 0, 1, 1], [], []>} : vector<2x32xbf16>, vector<32x32xbf16>, vector<2x32xf32> -> vector<2x32xf32>
    %16 = arith.addf %13, %15 : vector<2x32xf32>
    %17 = math.tanh %16 : vector<2x32xf32>
    %c0_9 = arith.constant 0 : index
    %c0_10 = arith.constant 0 : index
    %c0_11 = arith.constant 0 : index
    %18 = vector.load %arg8[%c0_9, %c0_10, %c0_11] : memref<8x2x32xf32, #tpu.memory_space<vmem>>, vector<1x2x32xf32>
    %19 = vector.shape_cast %18 : vector<1x2x32xf32> to vector<2x32xf32>
    %20 = vector.shape_cast %17 : vector<2x32xf32> to vector<1x2x32xf32>
    tpu.vector_store %arg8[%c0_9, %c0_10, %c0_11], %20 {strides = array<i32>} : memref<8x2x32xf32, #tpu.memory_space<vmem>>, vector<1x2x32xf32>,
    %21 = vector.extract_strided_slice %10 {offsets = [1, 0, 0], sizes = [1, 2, 32], strides = [1, 1, 1]} : vector<8x2x32xf32> to vector<1x2x32xf32>
    %22 = vector.shape_cast %21 : vector<1x2x32xf32> to vector<2x32xf32>
    %23 = arith.truncf %17 : vector<2x32xf32> to vector<2x32xbf16>
    %cst_12 = arith.constant dense<0.000000e+00> : vector<2x32xf32>
    %24 = tpu.matmul %23, %0, %cst_12 {dimension_numbers = #tpu.dot_dimension_numbers<[1], [0], [0], [1], [0, 0, 1, 1], [], []>} : vector<2x32xbf16>, vector<32x32xbf16>, vector<2x32xf32> -> vector<2x32xf32>
    %25 = arith.addf %22, %24 : vector<2x32xf32>
    %26 = math.tanh %25 : vector<2x32xf32>
    %c1 = arith.constant 1 : index
    %c0_13 = arith.constant 0 : index
    %c0_14 = arith.constant 0 : index
    %27 = vector.load %arg8[%c1, %c0_13, %c0_14] : memref<8x2x32xf32, #tpu.memory_space<vmem>>, vector<1x2x32xf32>
    %28 = vector.shape_cast %27 : vector<1x2x32xf32> to vector<2x32xf32>
    %29 = vector.shape_cast %26 : vector<2x32xf32> to vector<1x2x32xf32>
    tpu.vector_store %arg8[%c1, %c0_13, %c0_14], %29 {strides = array<i32>} : memref<8x2x32xf32, #tpu.memory_space<vmem>>, vector<1x2x32xf32>,
    %30 = vector.extract_strided_slice %10 {offsets = [2, 0, 0], sizes = [1, 2, 32], strides = [1, 1, 1]} : vector<8x2x32xf32> to vector<1x2x32xf32>
    %31 = vector.shape_cast %30 : vector<1x2x32xf32> to vector<2x32xf32>
    %32 = arith.truncf %26 : vector<2x32xf32> to vector<2x32xbf16>
    %cst_15 = arith.constant dense<0.000000e+00> : vector<2x32xf32>
    %33 = tpu.matmul %32, %0, %cst_15 {dimension_numbers = #tpu.dot_dimension_numbers<[1], [0], [0], [1], [0, 0, 1, 1], [], []>} : vector<2x32xbf16>, vector<32x32xbf16>, vector<2x32xf32> -> vector<2x32xf32>
    %34 = arith.addf %31, %33 : vector<2x32xf32>
    %35 = math.tanh %34 : vector<2x32xf32>
    %c2 = arith.constant 2 : index
    %c0_16 = arith.constant 0 : index
    %c0_17 = arith.constant 0 : index
    %36 = vector.load %arg8[%c2, %c0_16, %c0_17] : memref<8x2x32xf32, #tpu.memory_space<vmem>>, vector<1x2x32xf32>
    %37 = vector.shape_cast %36 : vector<1x2x32xf32> to vector<2x32xf32>
    %38 = vector.shape_cast %35 : vector<2x32xf32> to vector<1x2x32xf32>
    tpu.vector_store %arg8[%c2, %c0_16, %c0_17], %38 {strides = array<i32>} : memref<8x2x32xf32, #tpu.memory_space<vmem>>, vector<1x2x32xf32>,
    %39 = vector.extract_strided_slice %10 {offsets = [3, 0, 0], sizes = [1, 2, 32], strides = [1, 1, 1]} : vector<8x2x32xf32> to vector<1x2x32xf32>
    %40 = vector.shape_cast %39 : vector<1x2x32xf32> to vector<2x32xf32>
    %41 = arith.truncf %35 : vector<2x32xf32> to vector<2x32xbf16>
    %cst_18 = arith.constant dense<0.000000e+00> : vector<2x32xf32>
    %42 = tpu.matmul %41, %0, %cst_18 {dimension_numbers = #tpu.dot_dimension_numbers<[1], [0], [0], [1], [0, 0, 1, 1], [], []>} : vector<2x32xbf16>, vector<32x32xbf16>, vector<2x32xf32> -> vector<2x32xf32>
    %43 = arith.addf %40, %42 : vector<2x32xf32>
    %44 = math.tanh %43 : vector<2x32xf32>
    %c3 = arith.constant 3 : index
    %c0_19 = arith.constant 0 : index
    %c0_20 = arith.constant 0 : index
    %45 = vector.load %arg8[%c3, %c0_19, %c0_20] : memref<8x2x32xf32, #tpu.memory_space<vmem>>, vector<1x2x32xf32>
    %46 = vector.shape_cast %45 : vector<1x2x32xf32> to vector<2x32xf32>
    %47 = vector.shape_cast %44 : vector<2x32xf32> to vector<1x2x32xf32>
    tpu.vector_store %arg8[%c3, %c0_19, %c0_20], %47 {strides = array<i32>} : memref<8x2x32xf32, #tpu.memory_space<vmem>>, vector<1x2x32xf32>,
    %48 = vector.extract_strided_slice %10 {offsets = [4, 0, 0], sizes = [1, 2, 32], strides = [1, 1, 1]} : vector<8x2x32xf32> to vector<1x2x32xf32>
    %49 = vector.shape_cast %48 : vector<1x2x32xf32> to vector<2x32xf32>
    %50 = arith.truncf %44 : vector<2x32xf32> to vector<2x32xbf16>
    %cst_21 = arith.constant dense<0.000000e+00> : vector<2x32xf32>
    %51 = tpu.matmul %50, %0, %cst_21 {dimension_numbers = #tpu.dot_dimension_numbers<[1], [0], [0], [1], [0, 0, 1, 1], [], []>} : vector<2x32xbf16>, vector<32x32xbf16>, vector<2x32xf32> -> vector<2x32xf32>
    %52 = arith.addf %49, %51 : vector<2x32xf32>
    %53 = math.tanh %52 : vector<2x32xf32>
    %c4 = arith.constant 4 : index
    %c0_22 = arith.constant 0 : index
    %c0_23 = arith.constant 0 : index
    %54 = vector.load %arg8[%c4, %c0_22, %c0_23] : memref<8x2x32xf32, #tpu.memory_space<vmem>>, vector<1x2x32xf32>
    %55 = vector.shape_cast %54 : vector<1x2x32xf32> to vector<2x32xf32>
    %56 = vector.shape_cast %53 : vector<2x32xf32> to vector<1x2x32xf32>
    tpu.vector_store %arg8[%c4, %c0_22, %c0_23], %56 {strides = array<i32>} : memref<8x2x32xf32, #tpu.memory_space<vmem>>, vector<1x2x32xf32>,
    %57 = vector.extract_strided_slice %10 {offsets = [5, 0, 0], sizes = [1, 2, 32], strides = [1, 1, 1]} : vector<8x2x32xf32> to vector<1x2x32xf32>
    %58 = vector.shape_cast %57 : vector<1x2x32xf32> to vector<2x32xf32>
    %59 = arith.truncf %53 : vector<2x32xf32> to vector<2x32xbf16>
    %cst_24 = arith.constant dense<0.000000e+00> : vector<2x32xf32>
    %60 = tpu.matmul %59, %0, %cst_24 {dimension_numbers = #tpu.dot_dimension_numbers<[1], [0], [0], [1], [0, 0, 1, 1], [], []>} : vector<2x32xbf16>, vector<32x32xbf16>, vector<2x32xf32> -> vector<2x32xf32>
    %61 = arith.addf %58, %60 : vector<2x32xf32>
    %62 = math.tanh %61 : vector<2x32xf32>
    %c5 = arith.constant 5 : index
    %c0_25 = arith.constant 0 : index
    %c0_26 = arith.constant 0 : index
    %63 = vector.load %arg8[%c5, %c0_25, %c0_26] : memref<8x2x32xf32, #tpu.memory_space<vmem>>, vector<1x2x32xf32>
    %64 = vector.shape_cast %63 : vector<1x2x32xf32> to vector<2x32xf32>
    %65 = vector.shape_cast %62 : vector<2x32xf32> to vector<1x2x32xf32>
    tpu.vector_store %arg8[%c5, %c0_25, %c0_26], %65 {strides = array<i32>} : memref<8x2x32xf32, #tpu.memory_space<vmem>>, vector<1x2x32xf32>,
    %66 = vector.extract_strided_slice %10 {offsets = [6, 0, 0], sizes = [1, 2, 32], strides = [1, 1, 1]} : vector<8x2x32xf32> to vector<1x2x32xf32>
    %67 = vector.shape_cast %66 : vector<1x2x32xf32> to vector<2x32xf32>
    %68 = arith.truncf %62 : vector<2x32xf32> to vector<2x32xbf16>
    %cst_27 = arith.constant dense<0.000000e+00> : vector<2x32xf32>
    %69 = tpu.matmul %68, %0, %cst_27 {dimension_numbers = #tpu.dot_dimension_numbers<[1], [0], [0], [1], [0, 0, 1, 1], [], []>} : vector<2x32xbf16>, vector<32x32xbf16>, vector<2x32xf32> -> vector<2x32xf32>
    %70 = arith.addf %67, %69 : vector<2x32xf32>
    %71 = math.tanh %70 : vector<2x32xf32>
    %c6 = arith.constant 6 : index
    %c0_28 = arith.constant 0 : index
    %c0_29 = arith.constant 0 : index
    %72 = vector.load %arg8[%c6, %c0_28, %c0_29] : memref<8x2x32xf32, #tpu.memory_space<vmem>>, vector<1x2x32xf32>
    %73 = vector.shape_cast %72 : vector<1x2x32xf32> to vector<2x32xf32>
    %74 = vector.shape_cast %71 : vector<2x32xf32> to vector<1x2x32xf32>
    tpu.vector_store %arg8[%c6, %c0_28, %c0_29], %74 {strides = array<i32>} : memref<8x2x32xf32, #tpu.memory_space<vmem>>, vector<1x2x32xf32>,
    %75 = vector.extract_strided_slice %10 {offsets = [7, 0, 0], sizes = [1, 2, 32], strides = [1, 1, 1]} : vector<8x2x32xf32> to vector<1x2x32xf32>
    %76 = vector.shape_cast %75 : vector<1x2x32xf32> to vector<2x32xf32>
    %77 = arith.truncf %71 : vector<2x32xf32> to vector<2x32xbf16>
    %cst_30 = arith.constant dense<0.000000e+00> : vector<2x32xf32>
    %78 = tpu.matmul %77, %0, %cst_30 {dimension_numbers = #tpu.dot_dimension_numbers<[1], [0], [0], [1], [0, 0, 1, 1], [], []>} : vector<2x32xbf16>, vector<32x32xbf16>, vector<2x32xf32> -> vector<2x32xf32>
    %79 = arith.addf %76, %78 : vector<2x32xf32>
    %80 = math.tanh %79 : vector<2x32xf32>
    %c7 = arith.constant 7 : index
    %c0_31 = arith.constant 0 : index
    %c0_32 = arith.constant 0 : index
    %81 = vector.load %arg8[%c7, %c0_31, %c0_32] : memref<8x2x32xf32, #tpu.memory_space<vmem>>, vector<1x2x32xf32>
    %82 = vector.shape_cast %81 : vector<1x2x32xf32> to vector<2x32xf32>
    %83 = vector.shape_cast %80 : vector<2x32xf32> to vector<1x2x32xf32>
    tpu.vector_store %arg8[%c7, %c0_31, %c0_32], %83 {strides = array<i32>} : memref<8x2x32xf32, #tpu.memory_space<vmem>>, vector<1x2x32xf32>,
    %c0_33 = arith.constant 0 : index
    %c0_34 = arith.constant 0 : index
    %84 = vector.load %arg7[%c0_33, %c0_34] : memref<2x32xf32, #tpu.memory_space<vmem>>, vector<2x32xf32>
    tpu.vector_store %arg7[%c0_33, %c0_34], %80 {strides = array<i32>} : memref<2x32xf32, #tpu.memory_space<vmem>>, vector<2x32xf32>,
    %c0_35 = arith.constant 0 : index
    %c0_36 = arith.constant 0 : index
    %c0_37 = arith.constant 0 : index
    %85 = vector.load %arg8[%c0_35, %c0_36, %c0_37] : memref<8x2x32xf32, #tpu.memory_space<vmem>>, vector<8x2x32xf32>
    %c0_38 = arith.constant 0 : index
    %c0_39 = arith.constant 0 : index
    %86 = vector.load %arg4[%c0_38, %c0_39] : memref<1x32xf32, #tpu.memory_space<vmem>>, vector<1x32xf32>
    %87 = vector.shape_cast %86 : vector<1x32xf32> to vector<1x1x32xf32>
    %88 = vector.broadcast %87 : vector<1x1x32xf32> to vector<8x2x32xf32>
    %89 = arith.mulf %85, %88 : vector<8x2x32xf32>
    %cst_40 = arith.constant dense<0.000000e+00> : vector<8x2xf32>
    %90 = vector.multi_reduction <add>, %89, %cst_40 [2] : vector<8x2x32xf32> to vector<8x2xf32>
    %91 = vector.shape_cast %90 : vector<8x2xf32> to vector<8x2x1xf32>
    %c0_41 = arith.constant 0 : index
    %c0_42 = arith.constant 0 : index
    %92 = vector.load %arg5[%c0_41, %c0_42] : memref<1x1xf32, #tpu.memory_space<vmem>>, vector<1x1xf32>
    %93 = vector.shape_cast %92 : vector<1x1xf32> to vector<1x1x1xf32>
    %94 = vector.broadcast %93 : vector<1x1x1xf32> to vector<8x2x1xf32>
    %95 = arith.addf %91, %94 : vector<8x2x1xf32>
    %96 = math.tanh %95 : vector<8x2x1xf32>
    %c0_43 = arith.constant 0 : index
    %c0_44 = arith.constant 0 : index
    %c0_45 = arith.constant 0 : index
    %97 = vector.load %arg6[%c0_43, %c0_44, %c0_45] : memref<8x2x1xf32, #tpu.memory_space<vmem>>, vector<8x2x1xf32>
    tpu.vector_store %arg6[%c0_43, %c0_44, %c0_45], %96 {strides = array<i32>} : memref<8x2x1xf32, #tpu.memory_space<vmem>>, vector<8x2x1xf32>,
    return
  }
}

</mosaic_0001>

<bundles_post_ra>
// kernel: tpu_custom_call.1
= control target key start
LH: loop header
LB: loop body
LE: loop exit
PB: predicated region body
PF: predicated region fallthrough
CT: control target
= control target key end

     0   :  { %s1028_s0 = inlined_call_operand.vmem [shape: f32[8,2,1], index: 0, kind: input, shape index: {}]   ;;  %s1029_s1 = inlined_call_operand.vmem [shape: f32[1,32], index: 1, kind: input, shape index: {}]   ;;  %s1030_s2 = inlined_call_operand.vmem [shape: bf16[32,32], index: 2, kind: input, shape index: {}]   ;;  %s1031_s3 = inlined_call_operand.vmem [shape: f32[1,32], index: 3, kind: input, shape index: {}]   ;;  %s1032_s4 = inlined_call_operand.vmem [shape: f32[1,32], index: 4, kind: input, shape index: {}]   ;;  %s1033_s5 = inlined_call_operand.<no memory space> [shape: f32[1,1], index: 5, kind: input, shape index: {}]   ;;  %s1034_s6 = inlined_call_operand.vmem [shape: f32[8,2,1], index: 6, kind: output, shape index: {0}]   ;;  %s1035_s7 = inlined_call_operand.hbm [shape: f32[2,32], index: 7, kind: output, shape index: {1}]  }
   0x1   :  { %v13_v0 = vstv %s1033_s5 }
   0x2   :  { %14 = vst [vmem:[#allocation3] sm:$0x1] %v13_v0 }
   0x3   :  { %v820_v1 = vld [vmem:[%s1030_s2] sm:$0xff]   ;;  %v770_v2 = vmov 0.0   ;;  %v828_v3 = vld [vmem:[%s1030_s2 + $0x8] sm:$0xff]   ;;  %vm771_vm0 = vmmov 0   ;;  %v772_v5 = vmov 0  }
   0x4   :  { %642 = vmatprep.subr.bf16.mxu0 %v770_v2  ;;  %650 = vmatprep.subr.bf16.mxu1 %v770_v2  ;;  %v33_v4 = vld [vmem:[%s1028_s0] sm:$0x3] }
   0x5   :  { %643 = vmatpush3.bf16.msra.mxu0 %v820_v1  ;;  %646 = vmatprep.mubr.msk.bf16.mxu0 %vm771_vm0, %v770_v2 }
   0x6   :  { %644 = vmatprep.subr.bf16.mxu0 %v770_v2  ;;  %710 = vset.pattern.permute.xlu0 %v772_v5 }
   0x7   :  { %44 = vperm.xlu0 %710, %v33_v4   ;;  %651 = vmatpush3.bf16.msra.mxu1 %v820_v1 }
   0x8   :  { %15 = vsyncpa [#allocation5], 0  ;;  %v34_v6 = vld [vmem:[%s1028_s0 + $0x2] sm:$0x3]  ;;  %652 = vmatprep.subr.bf16.mxu1 %v770_v2  ;;  %654 = vmatprep.mubr.msk.bf16.mxu1 %vm771_vm0, %v770_v2  ;;  %v37_v7 = vld [vmem:[%s1028_s0 + $0x8] sm:$0x3] }
   0x9   :  { %645 = vmatpush3.bf16.msra.mxu0 %v828_v3  ;;  %711 = vset.pattern.permute.xlu1 %v772_v5  ;;  %v39_v8 = vld [vmem:[%s1028_s0 + $0xc] sm:$0x3]  ;;  %v862_v9 = vld [vmem:[%s1029_s1] ss:$0 sm:$0xff]  ;;  %vm169_vm1 = vcmask 254976   ;;  %vm123_vm2 = vcmask 261120  }
   0xa   :  { %658 = vmatprep.subr.bf16.mxu0 %v770_v2  ;;  %v868_v12 = vld [vmem:[%s1031_s3] ss:$0 sm:$0xff]  ;;  %v35_v25 = vld [vmem:[%s1028_s0 + $0x4] sm:$0x3]  ;;  %v36_v26 = vld [vmem:[%s1028_s0 + $0x6] sm:$0x3] }
   0xb   :  { %49 = vperm.xlu0 %710, %v34_v6   ;;  %653 = vmatpush3.bf16.msra.mxu1 %v828_v3  ;;  %v880_v21 = vld [vmem:[%s1032_s4] ss:$0 sm:$0xff]  ;;  %v38_v27 = vld [vmem:[%s1028_s0 + $0xa] sm:$0x3]  ;;  %v40_v28 = vld [vmem:[%s1028_s0 + $0xe] sm:$0x3] }
   0xc   :  { %647 = vmatmul.mubr.bf16.vlgmr.msra.gmra.mrb[0].mxu0 %v772_v5  ;;  %666 = vmatprep.subr.bf16.mxu1 %v770_v2  ;;  %v902_v32 = vld [vmem:[#allocation3] ss:$0 sm:$0xff]  ;;  %vm578_vm3 = vcmask 1024   ;;  %s773_s12 = smov [#allocation4]  }
   0xd   :  { %659 = vmatpush3.bf16.msra.mxu0 %v820_v1  ;;  %662 = vmatprep.mubr.msk.bf16.mxu0 %vm771_vm0, %v770_v2  ;;  %s595_s13 = sshll.u32 %s773_s12, 4  ;;  %s596_s13 = int_to_ptr.vmem [resolvable:$true] %s595_s13 }
   0xe   :  { %660 = vmatprep.subr.bf16.mxu0 %v770_v2  ;;  %54 = vperm.xlu1 %711, %v35_v25   ;;  %s746_s14 = scalar_lea.vmem %s596_s13, 32  ;;  %p751_p1 = scmp.lt.s32.totalorder %s596_s13, %s596_s13 }
   0xf   :  { %64 = vperm.xlu0 %710, %v37_v7   ;;  %p747_p0 = scmp.ne.s32.totalorder %s596_s13, %s746_s14  ;;  %p752_p2 = scmp.lt.s32.totalorder %s746_s14, %s746_s14 }
  0x11   :  { %661 = vmatpush3.bf16.msra.mxu0 %v828_v3  ;;  %p753_p3 = por %p752_p2, %p751_p1 }
  0x12   :  { %674 = vmatprep.subr.bf16.mxu0 %v770_v2  ;;  %59 = vperm.xlu1 %711, %v36_v26  }
  0x13   :  { %74 = vperm.xlu0 %710, %v39_v8   ;;  %p754_p4 = pnand %p753_p3, %p747_p0 }
  0x16   :  { %69 = vperm.xlu1 %711, %v38_v27  }
  0x1a   :  { %79 = vperm.xlu1 %711, %v40_v28  }
  0x86   :  { %v45_v10 = vpop.permute.xlu0 %44 }
  0x87   :  { %v88_v11 = vmul.f32 %v862_v9, %v45_v10 }
  0x89   :  { %v103_v13 = vadd.f32 %v868_v12, %v88_v11 }
  0x8a   :  { %v50_v29 = vpop.permute.xlu0 %49 }
  0x8b   :  { %v89_v36 = vmul.f32 %v862_v9, %v50_v29 }
  0x8d   :  { %v104_v37 = vadd.f32 %v868_v12, %v89_v36  ;;  %v55_v48 = vpop.permute.xlu1 %54 }
  0x8e   :  { %v898_v30 = vpop.permute.xlu0 %64  ;;  %v90_v55 = vmul.f32 %v862_v9, %v55_v48 }
  0x8f   :  { %v92_v27 = vmul.f32 %v862_v9, %v898_v30 }
  0x90   :  { %v105_v56 = vadd.f32 %v868_v12, %v90_v55 }
  0x91   :  { %v60_v49 = vpop.permute.xlu1 %59  ;;  %v107_v28 = vadd.f32 %v868_v12, %v92_v27 }
  0x92   :  { %v900_v31 = vpop.permute.xlu0 %74  ;;  %v91_v10 = vmul.f32 %v862_v9, %v60_v49 }
  0x94   :  { %v106_v11 = vadd.f32 %v868_v12, %v91_v10 }
  0x95   :  { %v921_v50 = vpop.permute.xlu1 %69 }
  0x99   :  { %v923_v51 = vpop.permute.xlu1 %79 }
  0xdf   :  { %v161_v14 = vpop.f32.mrb[0].mxu0 }
  0xe0   :  { %v167_v15 = vadd.f32 %v161_v14, %v103_v13  ;;  %v648_v16 = vpop.f32.mrb[1].mxu0 }
  0xe1   :  { %v164_v17 = vpop.f32.mrb[2].mxu0 }
  0xe2   :  { %714 = vtanh.f32 %v167_v15  ;;  %v649_v18 = vpop.f32.mrb[3].mxu0 }
  0xec   :  { %v715_v19 = vpop.eup %714 }
  0xed   :  { %170 = vst.msk [vmem:[#allocation2] sm:$0x3] %vm169_vm1, %v715_v19  ;;  %v171_v20 = vpack.c.bf16 %v715_v19, %v715_v19 }
  0xef   :  { %655 = vmatmul.mubr.msk.bf16.vlgmr.msra.gmra.mrb[0].mxu1 %vm123_vm2, %v171_v20 }
  0xf0   :  { %667 = vmatpush3.bf16.msra.mxu1 %v820_v1  ;;  %670 = vmatprep.mubr.msk.bf16.mxu1 %vm771_vm0, %v770_v2 }
  0xf1   :  { %668 = vmatprep.subr.bf16.mxu1 %v770_v2 }
  0xf4   :  { %v508_v22 = vld [vmem:[#allocation2] sm:$0x3]  ;;  %669 = vmatpush3.bf16.msra.mxu1 %v828_v3 }
  0xf5   :  { %v523_v23 = vmul.f32 %v880_v21, %v508_v22  ;;  %682 = vmatprep.subr.bf16.mxu1 %v770_v2 }
  0xf7   :  { %v531_v24 = vsel %vm169_vm1, %v523_v23, 0.0 }
  0xf8   :  { %532 = vadd.xlane.f32.xlu0 %v531_v24 }
 0x185   :  { %v533_v33 = vpop.xlane.xlu0 %532 }
 0x186   :  { %v562_v34 = vadd.f32 %v902_v32, %v533_v33 }
 0x188   :  { %716 = vtanh.f32 %v562_v34 }
 0x192   :  { %v717_v35 = vpop.eup %716 }
 0x193   :  { %579 = vst.msk [vmem:[%s1034_s6] sm:$0x3] %vm578_vm3, %v717_v35 }
 0x1c2   :  { %v209_v38 = vpop.f32.mrb[0].mxu1 }
 0x1c3   :  { %v215_v39 = vadd.f32 %v209_v38, %v104_v37  ;;  %v656_v40 = vpop.f32.mrb[1].mxu1 }
 0x1c4   :  { %v212_v41 = vpop.f32.mrb[2].mxu1 }
 0x1c5   :  { %718 = vtanh.f32 %v215_v39  ;;  %v657_v42 = vpop.f32.mrb[3].mxu1 }
 0x1cf   :  { %v719_v43 = vpop.eup %718 }
 0x1d0   :  { %218 = vst.msk [vmem:[#allocation2 + $0x2] sm:$0x3] %vm169_vm1, %v719_v43  ;;  %v219_v44 = vpack.c.bf16 %v719_v43, %v719_v43 }
 0x1d2   :  { %663 = vmatmul.mubr.msk.bf16.vlgmr.msra.gmra.mrb[4].mxu0 %vm123_vm2, %v219_v44 }
 0x1d3   :  { %675 = vmatpush3.bf16.msra.mxu0 %v820_v1  ;;  %678 = vmatprep.mubr.msk.bf16.mxu0 %vm771_vm0, %v770_v2 }
 0x1d4   :  { %676 = vmatprep.subr.bf16.mxu0 %v770_v2 }
 0x1d7   :  { %v509_v45 = vld [vmem:[#allocation2 + $0x2] sm:$0x3]  ;;  %677 = vmatpush3.bf16.msra.mxu0 %v828_v3 }
 0x1d8   :  { %v524_v46 = vmul.f32 %v880_v21, %v509_v45  ;;  %690 = vmatprep.subr.bf16.mxu0 %v770_v2 }
 0x1da   :  { %v534_v47 = vsel %vm169_vm1, %v524_v46, 0.0 }
 0x1db   :  { %535 = vadd.xlane.f32.xlu1 %v534_v47 }
 0x268   :  { %v536_v52 = vpop.xlane.xlu1 %535 }
 0x269   :  { %v563_v53 = vadd.f32 %v902_v32, %v536_v52 }
 0x26b   :  { %720 = vtanh.f32 %v563_v53 }
 0x275   :  { %v721_v54 = vpop.eup %720 }
 0x276   :  { %580 = vst.msk [vmem:[%s1034_s6 + $0x2] sm:$0x3] %vm578_vm3, %v721_v54 }
 0x2a5   :  { %v257_v57 = vpop.f32.mrb[4].mxu0 }
 0x2a6   :  { %v263_v58 = vadd.f32 %v257_v57, %v105_v56  ;;  %v664_v59 = vpop.f32.mrb[5].mxu0  ;;  %v94_v57 = vmul.f32 %v862_v9, %v900_v31 }
 0x2a7   :  { %v260_v60 = vpop.f32.mrb[6].mxu0 }
 0x2a8   :  { %722 = vtanh.f32 %v263_v58  ;;  %v665_v61 = vpop.f32.mrb[7].mxu0  ;;  %v109_v58 = vadd.f32 %v868_v12, %v94_v57 }
 0x2b2   :  { %v723_v62 = vpop.eup %722 }
 0x2b3   :  { %266 = vst.msk [vmem:[#allocation2 + $0x4] sm:$0x3] %vm169_vm1, %v723_v62  ;;  %v267_v63 = vpack.c.bf16 %v723_v62, %v723_v62 }
 0x2b5   :  { %671 = vmatmul.mubr.msk.bf16.vlgmr.msra.gmra.mrb[4].mxu1 %vm123_vm2, %v267_v63 }
 0x2b6   :  { %683 = vmatpush3.bf16.msra.mxu1 %v820_v1  ;;  %686 = vmatprep.mubr.msk.bf16.mxu1 %vm771_vm0, %v770_v2 }
 0x2b7   :  { %684 = vmatprep.subr.bf16.mxu1 %v770_v2 }
 0x2ba   :  { %v510_v0 = vld [vmem:[#allocation2 + $0x4] sm:$0x3]  ;;  %685 = vmatpush3.bf16.msra.mxu1 %v828_v3 }
 0x2bb   :  { %v525_v4 = vmul.f32 %v880_v21, %v510_v0  ;;  %698 = vmatprep.subr.bf16.mxu1 %v770_v2 }
 0x2bd   :  { %v537_v5 = vsel %vm169_vm1, %v525_v4, 0.0 }
 0x2be   :  { %538 = vadd.xlane.f32.xlu0 %v537_v5 }
 0x34b   :  { %v539_v6 = vpop.xlane.xlu0 %538 }
 0x34c   :  { %v564_v7 = vadd.f32 %v902_v32, %v539_v6 }
 0x34e   :  { %724 = vtanh.f32 %v564_v7 }
 0x358   :  { %v725_v8 = vpop.eup %724 }
 0x359   :  { %581 = vst.msk [vmem:[%s1034_s6 + $0x4] sm:$0x3] %vm578_vm3, %v725_v8 }
 0x388   :  { %v305_v13 = vpop.f32.mrb[4].mxu1 }
 0x389   :  { %v311_v14 = vadd.f32 %v305_v13, %v106_v11  ;;  %v672_v15 = vpop.f32.mrb[5].mxu1  ;;  %v95_v11 = vmul.f32 %v862_v9, %v923_v51 }
 0x38a   :  { %v308_v16 = vpop.f32.mrb[6].mxu1 }
 0x38b   :  { %726 = vtanh.f32 %v311_v14  ;;  %v673_v17 = vpop.f32.mrb[7].mxu1  ;;  %v110_v13 = vadd.f32 %v868_v12, %v95_v11 }
 0x395   :  { %v727_v18 = vpop.eup %726 }
 0x396   :  { %314 = vst.msk [vmem:[#allocation2 + $0x6] sm:$0x3] %vm169_vm1, %v727_v18  ;;  %v315_v19 = vpack.c.bf16 %v727_v18, %v727_v18 }
 0x398   :  { %679 = vmatmul.mubr.msk.bf16.vlgmr.msra.gmra.mrb[8].mxu0 %vm123_vm2, %v315_v19 }
 0x399   :  { %691 = vmatpush3.bf16.msra.mxu0 %v820_v1  ;;  %694 = vmatprep.mubr.msk.bf16.mxu0 %vm771_vm0, %v770_v2 }
 0x39a   :  { %692 = vmatprep.subr.bf16.mxu0 %v770_v2 }
 0x39d   :  { %v511_v20 = vld [vmem:[#allocation2 + $0x6] sm:$0x3]  ;;  %693 = vmatpush3.bf16.msra.mxu0 %v828_v3 }
 0x39e   :  { %v526_v22 = vmul.f32 %v880_v21, %v511_v20 }
 0x3a0   :  { %v540_v23 = vsel %vm169_vm1, %v526_v22, 0.0 }
 0x3a1   :  { %541 = vadd.xlane.f32.xlu0 %v540_v23 }
 0x42e   :  { %v542_v24 = vpop.xlane.xlu0 %541 }
 0x42f   :  { %v565_v25 = vadd.f32 %v902_v32, %v542_v24 }
 0x431   :  { %728 = vtanh.f32 %v565_v25 }
 0x43b   :  { %v729_v26 = vpop.eup %728 }
 0x43c   :  { %582 = vst.msk [vmem:[%s1034_s6 + $0x6] sm:$0x3] %vm578_vm3, %v729_v26 }
 0x46b   :  { %v353_v29 = vpop.f32.mrb[8].mxu0 }
 0x46c   :  { %v359_v33 = vadd.f32 %v353_v29, %v107_v28  ;;  %v680_v34 = vpop.f32.mrb[9].mxu0 }
 0x46d   :  { %v356_v35 = vpop.f32.mrb[10].mxu0 }
 0x46e   :  { %730 = vtanh.f32 %v359_v33  ;;  %v681_v36 = vpop.f32.mrb[11].mxu0 }
 0x478   :  { %v731_v37 = vpop.eup %730 }
 0x479   :  { %362 = vst.msk [vmem:[#allocation2 + $0x8] sm:$0x3] %vm169_vm1, %v731_v37  ;;  %v363_v38 = vpack.c.bf16 %v731_v37, %v731_v37 }
 0x47b   :  { %687 = vmatmul.mubr.msk.bf16.vlgmr.msra.gmra.mrb[8].mxu1 %vm123_vm2, %v363_v38 }
 0x47c   :  { %699 = vmatpush3.bf16.msra.mxu1 %v820_v1  ;;  %702 = vmatprep.mubr.msk.bf16.mxu1 %vm771_vm0, %v770_v2  ;;  %v93_v1 = vmul.f32 %v862_v9, %v921_v50 }
 0x47d   :  { %700 = vmatprep.subr.bf16.mxu1 %v770_v2 }
 0x47e   :  { %v108_v2 = vadd.f32 %v868_v12, %v93_v1 }
 0x480   :  { %v512_v30 = vld [vmem:[#allocation2 + $0x8] sm:$0x3]  ;;  %701 = vmatpush3.bf16.msra.mxu1 %v828_v3 }
 0x481   :  { %v527_v39 = vmul.f32 %v880_v21, %v512_v30 }
 0x483   :  { %v543_v40 = vsel %vm169_vm1, %v527_v39, 0.0 }
 0x484   :  { %544 = vadd.xlane.f32.xlu1 %v543_v40 }
 0x511   :  { %v545_v41 = vpop.xlane.xlu1 %544 }
 0x512   :  { %v566_v42 = vadd.f32 %v902_v32, %v545_v41 }
 0x514   :  { %732 = vtanh.f32 %v566_v42 }
 0x51e   :  { %v733_v43 = vpop.eup %732 }
 0x51f   :  { %583 = vst.msk [vmem:[%s1034_s6 + $0x8] sm:$0x3] %vm578_vm3, %v733_v43 }
 0x54e   :  { %v401_v3 = vpop.f32.mrb[8].mxu1 }
 0x54f   :  { %v407_v44 = vadd.f32 %v401_v3, %v108_v2  ;;  %v688_v45 = vpop.f32.mrb[9].mxu1 }
 0x550   :  { %v404_v46 = vpop.f32.mrb[10].mxu1 }
 0x551   :  { %734 = vtanh.f32 %v407_v44  ;;  %v689_v47 = vpop.f32.mrb[11].mxu1 }
 0x55b   :  { %v735_v48 = vpop.eup %734 }
 0x55c   :  { %410 = vst.msk [vmem:[#allocation2 + $0xa] sm:$0x3] %vm169_vm1, %v735_v48  ;;  %v411_v49 = vpack.c.bf16 %v735_v48, %v735_v48 }
 0x55e   :  { %695 = vmatmul.mubr.msk.bf16.vlgmr.msra.gmra.mrb[12].mxu0 %vm123_vm2, %v411_v49 }
 0x563   :  { %v513_v52 = vld [vmem:[#allocation2 + $0xa] sm:$0x3] }
 0x564   :  { %v528_v53 = vmul.f32 %v880_v21, %v513_v52 }
 0x566   :  { %v546_v54 = vsel %vm169_vm1, %v528_v53, 0.0 }
 0x567   :  { %547 = vadd.xlane.f32.xlu0 %v546_v54 }
 0x5f4   :  { %v548_v50 = vpop.xlane.xlu0 %547 }
 0x5f5   :  { %v567_v55 = vadd.f32 %v902_v32, %v548_v50 }
 0x5f7   :  { %736 = vtanh.f32 %v567_v55 }
 0x601   :  { %v737_v56 = vpop.eup %736 }
 0x602   :  { %584 = vst.msk [vmem:[%s1034_s6 + $0xa] sm:$0x3] %vm578_vm3, %v737_v56 }
 0x631   :  { %v449_v59 = vpop.f32.mrb[12].mxu0 }
 0x632   :  { %v455_v60 = vadd.f32 %v449_v59, %v109_v58  ;;  %v696_v61 = vpop.f32.mrb[13].mxu0 }
 0x633   :  { %v452_v62 = vpop.f32.mrb[14].mxu0 }
 0x634   :  { %738 = vtanh.f32 %v455_v60  ;;  %v697_v63 = vpop.f32.mrb[15].mxu0 }
 0x63e   :  { %v739_v0 = vpop.eup %738 }
 0x63f   :  { %458 = vst.msk [vmem:[#allocation2 + $0xc] sm:$0x3] %vm169_vm1, %v739_v0  ;;  %v459_v4 = vpack.c.bf16 %v739_v0, %v739_v0 }
 0x641   :  { %703 = vmatmul.mubr.msk.bf16.vlgmr.msra.gmra.mrb[12].mxu1 %vm123_vm2, %v459_v4 }
 0x646   :  { %v514_v5 = vld [vmem:[#allocation2 + $0xc] sm:$0x3] }
 0x647   :  { %v529_v6 = vmul.f32 %v880_v21, %v514_v5 }
 0x649   :  { %v549_v7 = vsel %vm169_vm1, %v529_v6, 0.0 }
 0x64a   :  { %550 = vadd.xlane.f32.xlu1 %v549_v7 }
 0x6d7   :  { %v551_v31 = vpop.xlane.xlu1 %550 }
 0x6d8   :  { %v568_v8 = vadd.f32 %v902_v32, %v551_v31 }
 0x6da   :  { %740 = vtanh.f32 %v568_v8 }
 0x6e4   :  { %v741_v10 = vpop.eup %740 }
 0x6e5   :  { %585 = vst.msk [vmem:[%s1034_s6 + $0xc] sm:$0x3] %vm578_vm3, %v741_v10 }
 0x714   :  { %v497_v14 = vpop.f32.mrb[12].mxu1 }
 0x715   :  { %v503_v15 = vadd.f32 %v497_v14, %v110_v13  ;;  %v704_v16 = vpop.f32.mrb[13].mxu1 }
 0x716   :  { %v500_v17 = vpop.f32.mrb[14].mxu1 }
 0x717   :  { %742 = vtanh.f32 %v503_v15  ;;  %v705_v18 = vpop.f32.mrb[15].mxu1 }
 0x721   :  { %v743_v19 = vpop.eup %742 }
 0x722   :  { %506 = vst.msk [vmem:[#allocation2 + $0xe] sm:$0x3] %vm169_vm1, %v743_v19  ;;  %507 = vst.msk [vmem:[#allocation4] sm:$0x3] %vm169_vm1, %v743_v19 }
 0x729   :  { %v515_v20 = vld [vmem:[#allocation2 + $0xe] sm:$0x3] }
 0x72a   :  { %v530_v22 = vmul.f32 %v880_v21, %v515_v20 }
 0x72c   :  { %v552_v23 = vsel %vm169_vm1, %v530_v22, 0.0 }
 0x72d   :  { %553 = vadd.xlane.f32.xlu0 %v552_v23 }
 0x72e   :  { %757 = shalt.err (!%p754_p4)
}
 0x72f   :  { %s758_s1 = scalar_lea.hbm %s1035_s7, 32 }
 0x730   :  { %p759_p5 = scmp.ne.s32.totalorder %s1035_s7, %s758_s1  ;;  %p762_p6 = scmp.lt.u32.totalorder %s758_s1, %s1035_s7 }
 0x732   :  { %p764_p7 = pnand %p762_p6, %p759_p5 }
 0x734   :  { %767 = shalt.err (!%p764_p7)
}
 0x735   :  { %598 = dma.vmem_to_hbm [thread:$0]  %s596_s13, 32, %s1035_s7, [#allocation5]  }
 0x7ba   :  { %v554_v9 = vpop.xlane.xlu0 %553 }
 0x7bb   :  { %v569_v12 = vadd.f32 %v902_v32, %v554_v9 }
 0x7bd   :  { %744 = vtanh.f32 %v569_v12 }
 0x7c7   :  { %v745_v21 = vpop.eup %744 }
 0x7c8   :  { %586 = vst.msk [vmem:[%s1034_s6 + $0xe] sm:$0x3] %vm578_vm3, %v745_v21 }
 0x7c9   :  { %768 = dma.done.wait [#allocation5], 32  }
 0x7ca   :  { %769 = vsyncadd [#allocation5], 4294967264 }
 0x7cb   :  { %604 = vsyncpa [#allocation5], 1 }

</bundles_post_ra>
